<compile_context>
chip_gen: v6e
topology: v6e:2x2x1
jax: 0.10.0
libtpu: 0.0.40
codegen_flags: <defaults>
</compile_context>

<pallas_src>
import functools

import numpy as np
import jax
import jax.numpy as jnp
from jax.experimental import pallas as pl
from jax.experimental.pallas import tpu as pltpu


# ---------------------------------------------------------------------------
# Resampling matrices (PyTorch F.interpolate semantics), built with NumPy at
# trace time -> pure compile-time constants.
# ---------------------------------------------------------------------------
def _bilinear_matrix(out_size, in_size):
    """Row matrix for F.interpolate(mode='bilinear', align_corners=False)."""
    scale = in_size / out_size
    i = np.arange(out_size, dtype=np.float64)
    src = (i + 0.5) * scale - 0.5
    src = np.maximum(src, 0.0)
    i0 = np.minimum(np.floor(src).astype(np.int64), in_size - 1)
    i1 = np.minimum(i0 + 1, in_size - 1)
    w1 = src - i0
    w0 = 1.0 - w1
    m = np.zeros((out_size, in_size), np.float64)
    rows = np.arange(out_size)
    np.add.at(m, (rows, i0), w0)
    np.add.at(m, (rows, i1), w1)
    return m


def _nearest_matrix(out_size, in_size):
    """Row matrix for F.interpolate(mode='nearest') using exact int math."""
    i = np.arange(out_size, dtype=np.int64)
    src = np.minimum((i * in_size) // out_size, in_size - 1)
    m = np.zeros((out_size, in_size), np.float64)
    m[np.arange(out_size), src] = 1.0
    return m


@functools.lru_cache(maxsize=None)
def _resample_constants(H, W):
    """Precomposed flattened-plane resampling operators (transposed, f32).

    Returns:
      kdnT : (H*W, Hd*Wd)     bilinear x0.5 down-sample      (x_row @ kdnT)
      kupT : (Hd*Wd, 2*H*W)   [nearest x2 | bilinear x2] up  (d_row @ kupT)
    The laplacian up(down(x)) operator is NOT materialized: it equals
    (x @ kdnT) @ kupT[:, H*W:]  (k_lap = k_agg @ k_dn).
    """
    Hd, Wd = H // 2, W // 2
    bh_dn = _bilinear_matrix(Hd, H)
    bw_dn = _bilinear_matrix(Wd, W)
    bh_up = _bilinear_matrix(H, Hd)
    bw_up = _bilinear_matrix(W, Wd)
    nh_up = _nearest_matrix(H, Hd)
    nw_up = _nearest_matrix(W, Wd)

    k_dn = np.kron(bh_dn, bw_dn)           # (Hd*Wd, H*W)  bilinear x0.5
    k_near = np.kron(nh_up, nw_up)         # (H*W,  Hd*Wd) nearest  x2
    k_agg = np.kron(bh_up, bw_up)          # (H*W,  Hd*Wd) bilinear x2

    kdnT = np.ascontiguousarray(k_dn.T, dtype=np.float32)              # (HW, HdWd)
    kupT = np.ascontiguousarray(
        np.concatenate([k_near.T, k_agg.T], axis=1), dtype=np.float32)  # (HdWd, 2*HW)
    return kdnT, kupT


def _pick_batch_block(N, max_nb=8):
    """Largest batch fold nb (divisor of N, <= max_nb) that still leaves
    >=2 grid steps when possible (keeps both v7x TensorCores busy)."""
    divs = [d for d in range(1, min(N, max_nb) + 1) if N % d == 0]
    two_step = [d for d in divs if N // d >= 2]
    return max(two_step) if two_step else max(divs)


# ---------------------------------------------------------------------------
# Fused Pallas kernel.
# ---------------------------------------------------------------------------
def lapstyle_fused_kernel(kdn_ref, kup_ref,
                          wd_ref, bd_ref, wr1_ref, wr2_ref, br_ref,
                          content_ref, style_ref, out_ref,
                          *, nb, C, Cout, Cs, HW):
    x = content_ref[0]                                       # (nb*C,  HW)  f32
    s = style_ref[0]                                         # (nb*Cs, Ls)  f32

    # (1) content_down = bilinear x0.5 down-sample: one bf16 GEMM, f32 acc.
    content_down = jnp.dot(x.astype(jnp.bfloat16), kdn_ref[...],
                           preferred_element_type=jnp.float32)       # (nb*C, HdWd)

    # (2) contur = laplacian(content) = x - up_bilinear(content_down).
    #     Reuses the bilinear half of the combined up-sample operator
    #     (k_lap = k_agg @ k_dn), so no dedicated (HW, HW) constant.
    contur = x - jnp.dot(content_down.astype(jnp.bfloat16), kup_ref[:, HW:],
                         preferred_element_type=jnp.float32)         # (nb*C, HW)

    # (3) Stand-in DraftingNetwork: per-image 1x1 channel mix (scalar weights
    #     from SMEM -> free broadcast) + bias + global style-mean shift.
    s_mean = jnp.mean(s, axis=-1, keepdims=True)                     # (nb*Cs, 1)
    draft_rows = []
    for b in range(nb):
        for o in range(Cout):
            acc = wd_ref[o * C] * content_down[b * C:b * C + 1, :]
            for c in range(1, C):
                acc = acc + wd_ref[o * C + c] * content_down[b * C + c:b * C + c + 1, :]
            draft_rows.append(acc + bd_ref[o])
    draft = jnp.concatenate(draft_rows, axis=0) + s_mean             # (nb*Cout, HdWd)

    # (4) ONE GEMM for both up-samples of the draft:
    #     columns [:HW]  -> nearest x2   (revision input)
    #     columns [HW:]  -> bilinear x2  (aggregate term)
    both = jnp.dot(draft.astype(jnp.bfloat16), kup_ref[...],
                   preferred_element_type=jnp.float32)               # (nb*Cout, 2*HW)
    up_draft = both[:, :HW]
    draft_agg = both[:, HW:]

    # (5) Stand-in RevisionNetwork on (upsampled_draft, contur) with split
    #     weights (no concat materialization), scalar FMAs from SMEM.
    rev_rows = []
    for b in range(nb):
        for o in range(Cout):
            acc = wr1_ref[o * Cout] * up_draft[b * Cout:b * Cout + 1, :]
            for c in range(1, Cout):
                acc = acc + wr1_ref[o * Cout + c] * up_draft[b * Cout + c:b * Cout + c + 1, :]
            for c in range(C):
                acc = acc + wr2_ref[o * C + c] * contur[b * C + c:b * C + c + 1, :]
            rev_rows.append(acc + br_ref[o])
    revised = jnp.concatenate(rev_rows, axis=0)                      # (nb*Cout, HW)

    # (6) aggregate: bilinear x2 of draft + revised.
    out_ref[0] = draft_agg + revised


# ---------------------------------------------------------------------------
# Forward wrapper.
# ---------------------------------------------------------------------------
def lapstyle_forward(content, style, params):
    N, C, H, W = content.shape
    Ns, Cs, Hs, Ws = style.shape
    Cout = params["w_d"].shape[0]
    assert Cs == Cout, "stand-in drafting adds a per-channel style mean (Cs == Cout)"
    assert Ns == N
    HW, Ls = H * W, Hs * Ws

    kdnT_np, kupT_np = _resample_constants(H, W)
    HdWd = kdnT_np.shape[1]
    kdnT = jnp.asarray(kdnT_np, dtype=jnp.bfloat16)                  # (HW, HdWd)
    kupT = jnp.asarray(kupT_np, dtype=jnp.bfloat16)                  # (HdWd, 2*HW)

    nb = _pick_batch_block(N)
    G = N // nb

    content_g = content.reshape(G, nb * C, HW)
    style_g = style.reshape(G, nb * Cs, Ls)

    w_r = params["w_r"]
    w_r1 = w_r[:, :Cout].reshape(-1)       # (Cout*Cout,)  draft half
    w_r2 = w_r[:, Cout:].reshape(-1)       # (Cout*C,)     contur half
    w_d = params["w_d"].reshape(-1)        # (Cout*C,)
    b_d = params["b_d"].reshape(-1)        # (Cout,)
    b_r = params["b_r"].reshape(-1)        # (Cout,)

    kernel = functools.partial(lapstyle_fused_kernel,
                               nb=nb, C=C, Cout=Cout, Cs=Cs, HW=HW)

    smem_spec = pl.BlockSpec(memory_space=pltpu.MemorySpace.SMEM)

    out_flat = pl.pallas_call(
        kernel,
        out_shape=jax.ShapeDtypeStruct((G, nb * Cout, HW), jnp.float32),
        grid=(G,),
        in_specs=[
            pl.BlockSpec((HW, HdWd), lambda i: (0, 0)),          # kdnT (bf16)
            pl.BlockSpec((HdWd, 2 * HW), lambda i: (0, 0)),      # kupT (bf16)
            smem_spec,                                           # w_d
            smem_spec,                                           # b_d
            smem_spec,                                           # w_r1
            smem_spec,                                           # w_r2
            smem_spec,                                           # b_r
            pl.BlockSpec((1, nb * C, HW), lambda i: (i, 0, 0)),  # content
            pl.BlockSpec((1, nb * Cs, Ls), lambda i: (i, 0, 0)),  # style
        ],
        out_specs=pl.BlockSpec((1, nb * Cout, HW), lambda i: (i, 0, 0)),
        compiler_params=pltpu.CompilerParams(
            dimension_semantics=("parallel",)),
    )(kdnT, kupT, w_d, b_d, w_r1, w_r2, b_r, content_g, style_g)

    return out_flat.reshape(N, Cout, H, W)


lapstyle_forward_jit = jax.jit(lapstyle_forward)


# ---------------------------------------------------------------------------
# Pure-JAX f32 reference (same math, no Pallas) for a sanity check.
# ---------------------------------------------------------------------------
def lapstyle_reference(content, style, params):
    N, C, H, W = content.shape
    HW = H * W
    kdnT_np, kupT_np = _resample_constants(H, W)
    kdnT = jnp.asarray(kdnT_np)
    knearT = jnp.asarray(kupT_np[:, :HW])
    kaggT = jnp.asarray(kupT_np[:, HW:])

    x = content.reshape(N, C, HW)
    s = style.reshape(N, style.shape[1], -1)
    cd = jnp.einsum('ncl,lm->ncm', x, kdnT)
    contur = x - jnp.einsum('ncl,lm->ncm', cd, kaggT)
    s_mean = jnp.mean(s, axis=-1, keepdims=True)
    draft = (jnp.einsum('oc,ncl->nol', params["w_d"], cd)
             + params["b_d"][None] + s_mean)
    up = jnp.einsum('ncl,lm->ncm', draft, knearT)
    Cout = params["w_d"].shape[0]
    w_r1, w_r2 = params["w_r"][:, :Cout], params["w_r"][:, Cout:]
    revised = (jnp.einsum('oc,ncl->nol', w_r1, up)
               + jnp.einsum('oc,ncl->nol', w_r2, contur)
               + params["b_r"][None])
    out = jnp.einsum('ncl,lm->ncm', draft, kaggT) + revised
    return out.reshape(N, Cout, H, W)


def init_params(key):
    k1, k2 = jax.random.split(key)
    return {
        "w_d": 0.1 * jax.random.normal(k1, (3, 3), jnp.float32),
        "b_d": jnp.zeros((3, 1), jnp.float32),
        "w_r": 0.1 * jax.random.normal(k2, (3, 6), jnp.float32),
        "b_r": jnp.zeros((3, 1), jnp.float32),
    }


if __name__ == "__main__":
    key = jax.random.PRNGKey(0)
    k_c, k_s, k_p = jax.random.split(key, 3)
    # Small shapes consistent with LapStyle (RGB content/style images).
    content = jax.random.normal(k_c, (2, 3, 16, 16), jnp.float32)
    style = jax.random.normal(k_s, (2, 3, 16, 16), jnp.float32)
    params = init_params(k_p)

    out = lapstyle_forward_jit(content, style, params)
    jax.block_until_ready(out)
    assert out.shape == (2, 3, 16, 16)
    assert bool(jnp.all(jnp.isfinite(out)))

    # Loose tolerance: the kernel runs its resample GEMMs with bf16 operator
    # constants (per perf review); everything else is f32.
    ref = lapstyle_reference(content, style, params)
    np.testing.assert_allclose(np.asarray(out), np.asarray(ref),
                               rtol=1e-1, atol=1e-1)
    print("KERNEL_OK")
</pallas_src>

<mosaic_0001>
module attributes {stable_mosaic.version = 11 : i64} {
  func.func @lapstyle_fused_kernel(%arg0: i32, %arg1: memref<256x64xbf16, #tpu.memory_space<vmem>>, %arg2: memref<64x512xbf16, #tpu.memory_space<vmem>>, %arg3: memref<9xf32, #tpu.memory_space<smem>>, %arg4: memref<3xf32, #tpu.memory_space<smem>>, %arg5: memref<9xf32, #tpu.memory_space<smem>>, %arg6: memref<9xf32, #tpu.memory_space<smem>>, %arg7: memref<3xf32, #tpu.memory_space<smem>>, %arg8: memref<1x3x256xf32, #tpu.memory_space<vmem>>, %arg9: memref<1x3x256xf32, #tpu.memory_space<vmem>>, %arg10: memref<1x3x256xf32, #tpu.memory_space<vmem>>) attributes {dimension_semantics = [#tpu.dimension_semantics<parallel>], iteration_bounds = array<i64: 2>, scalar_prefetch = 0 : i64, scratch_operands = 0 : i64, tpu.core_type = #tpu.core_type<tc>, window_params = [{pipeline_mode = #tpu.pipeline_mode<synchronous>, transform_indices = @transform_0, window_bounds = array<i64: 256, 64>}, {pipeline_mode = #tpu.pipeline_mode<synchronous>, transform_indices = @transform_1, window_bounds = array<i64: 64, 512>}, {transform_indices = @transform_2, window_bounds = array<i64: 9>}, {transform_indices = @transform_3, window_bounds = array<i64: 3>}, {transform_indices = @transform_4, window_bounds = array<i64: 9>}, {transform_indices = @transform_5, window_bounds = array<i64: 9>}, {transform_indices = @transform_6, window_bounds = array<i64: 3>}, {transform_indices = @transform_7, window_bounds = array<i64: 1, 3, 256>}, {transform_indices = @transform_8, window_bounds = array<i64: 1, 3, 256>}, {transform_indices = @transform_9, window_bounds = array<i64: 1, 3, 256>}]} {
    %c0 = arith.constant 0 : index
    %c0_0 = arith.constant 0 : index
    %c0_1 = arith.constant 0 : index
    %0 = vector.load %arg8[%c0, %c0_0, %c0_1] : memref<1x3x256xf32, #tpu.memory_space<vmem>>, vector<1x3x256xf32>
    %1 = vector.shape_cast %0 : vector<1x3x256xf32> to vector<3x256xf32>
    %c0_2 = arith.constant 0 : index
    %c0_3 = arith.constant 0 : index
    %c0_4 = arith.constant 0 : index
    %2 = vector.load %arg9[%c0_2, %c0_3, %c0_4] : memref<1x3x256xf32, #tpu.memory_space<vmem>>, vector<1x3x256xf32>
    %3 = vector.shape_cast %2 : vector<1x3x256xf32> to vector<3x256xf32>
    %4 = arith.truncf %1 : vector<3x256xf32> to vector<3x256xbf16>
    %c0_5 = arith.constant 0 : index
    %c0_6 = arith.constant 0 : index
    %5 = vector.load %arg1[%c0_5, %c0_6] : memref<256x64xbf16, #tpu.memory_space<vmem>>, vector<256x64xbf16>
    %cst = arith.constant dense<0.000000e+00> : vector<3x64xf32>
    %6 = tpu.matmul %4, %5, %cst {dimension_numbers = #tpu.dot_dimension_numbers<[1], [0], [0], [1], [0, 0, 1, 1], [], []>} : vector<3x256xbf16>, vector<256x64xbf16>, vector<3x64xf32> -> vector<3x64xf32>
    %7 = arith.truncf %6 : vector<3x64xf32> to vector<3x64xbf16>
    %c0_7 = arith.constant 0 : index
    %c256 = arith.constant 256 : index
    %8 = vector.load %arg2[%c0_7, %c256] : memref<64x512xbf16, #tpu.memory_space<vmem>>, vector<64x256xbf16>
    %cst_8 = arith.constant dense<0.000000e+00> : vector<3x256xf32>
    %9 = tpu.matmul %7, %8, %cst_8 {dimension_numbers = #tpu.dot_dimension_numbers<[1], [0], [0], [1], [0, 0, 1, 1], [], []>} : vector<3x64xbf16>, vector<64x256xbf16>, vector<3x256xf32> -> vector<3x256xf32>
    %10 = arith.subf %1, %9 : vector<3x256xf32>
    %cst_9 = arith.constant dense<0.000000e+00> : vector<3xf32>
    %11 = vector.multi_reduction <add>, %3, %cst_9 [1] : vector<3x256xf32> to vector<3xf32>
    %12 = vector.shape_cast %11 : vector<3xf32> to vector<3x1xf32>
    %cst_10 = arith.constant 2.560000e+02 : f32
    %13 = vector.broadcast %cst_10 : f32 to vector<3x1xf32>
    %14 = arith.divf %12, %13 : vector<3x1xf32>
    %c0_11 = arith.constant 0 : index
    %15 = memref.load %arg3[%c0_11] : memref<9xf32, #tpu.memory_space<smem>>
    %16 = vector.extract_strided_slice %6 {offsets = [0, 0], sizes = [1, 64], strides = [1, 1]} : vector<3x64xf32> to vector<1x64xf32>
    %17 = vector.broadcast %15 : f32 to vector<1x64xf32>
    %18 = arith.mulf %17, %16 : vector<1x64xf32>
    %c1 = arith.constant 1 : index
    %19 = memref.load %arg3[%c1] : memref<9xf32, #tpu.memory_space<smem>>
    %20 = vector.extract_strided_slice %6 {offsets = [1, 0], sizes = [1, 64], strides = [1, 1]} : vector<3x64xf32> to vector<1x64xf32>
    %21 = vector.broadcast %19 : f32 to vector<1x64xf32>
    %22 = arith.mulf %21, %20 : vector<1x64xf32>
    %23 = arith.addf %18, %22 : vector<1x64xf32>
    %c2 = arith.constant 2 : index
    %24 = memref.load %arg3[%c2] : memref<9xf32, #tpu.memory_space<smem>>
    %25 = vector.extract_strided_slice %6 {offsets = [2, 0], sizes = [1, 64], strides = [1, 1]} : vector<3x64xf32> to vector<1x64xf32>
    %26 = vector.broadcast %24 : f32 to vector<1x64xf32>
    %27 = arith.mulf %26, %25 : vector<1x64xf32>
    %28 = arith.addf %23, %27 : vector<1x64xf32>
    %c0_12 = arith.constant 0 : index
    %29 = memref.load %arg4[%c0_12] : memref<3xf32, #tpu.memory_space<smem>>
    %30 = vector.broadcast %29 : f32 to vector<1x64xf32>
    %31 = arith.addf %28, %30 : vector<1x64xf32>
    %c3 = arith.constant 3 : index
    %32 = memref.load %arg3[%c3] : memref<9xf32, #tpu.memory_space<smem>>
    %33 = vector.extract_strided_slice %6 {offsets = [0, 0], sizes = [1, 64], strides = [1, 1]} : vector<3x64xf32> to vector<1x64xf32>
    %34 = vector.broadcast %32 : f32 to vector<1x64xf32>
    %35 = arith.mulf %34, %33 : vector<1x64xf32>
    %c4 = arith.constant 4 : index
    %36 = memref.load %arg3[%c4] : memref<9xf32, #tpu.memory_space<smem>>
    %37 = vector.extract_strided_slice %6 {offsets = [1, 0], sizes = [1, 64], strides = [1, 1]} : vector<3x64xf32> to vector<1x64xf32>
    %38 = vector.broadcast %36 : f32 to vector<1x64xf32>
    %39 = arith.mulf %38, %37 : vector<1x64xf32>
    %40 = arith.addf %35, %39 : vector<1x64xf32>
    %c5 = arith.constant 5 : index
    %41 = memref.load %arg3[%c5] : memref<9xf32, #tpu.memory_space<smem>>
    %42 = vector.extract_strided_slice %6 {offsets = [2, 0], sizes = [1, 64], strides = [1, 1]} : vector<3x64xf32> to vector<1x64xf32>
    %43 = vector.broadcast %41 : f32 to vector<1x64xf32>
    %44 = arith.mulf %43, %42 : vector<1x64xf32>
    %45 = arith.addf %40, %44 : vector<1x64xf32>
    %c1_13 = arith.constant 1 : index
    %46 = memref.load %arg4[%c1_13] : memref<3xf32, #tpu.memory_space<smem>>
    %47 = vector.broadcast %46 : f32 to vector<1x64xf32>
    %48 = arith.addf %45, %47 : vector<1x64xf32>
    %c6 = arith.constant 6 : index
    %49 = memref.load %arg3[%c6] : memref<9xf32, #tpu.memory_space<smem>>
    %50 = vector.extract_strided_slice %6 {offsets = [0, 0], sizes = [1, 64], strides = [1, 1]} : vector<3x64xf32> to vector<1x64xf32>
    %51 = vector.broadcast %49 : f32 to vector<1x64xf32>
    %52 = arith.mulf %51, %50 : vector<1x64xf32>
    %c7 = arith.constant 7 : index
    %53 = memref.load %arg3[%c7] : memref<9xf32, #tpu.memory_space<smem>>
    %54 = vector.extract_strided_slice %6 {offsets = [1, 0], sizes = [1, 64], strides = [1, 1]} : vector<3x64xf32> to vector<1x64xf32>
    %55 = vector.broadcast %53 : f32 to vector<1x64xf32>
    %56 = arith.mulf %55, %54 : vector<1x64xf32>
    %57 = arith.addf %52, %56 : vector<1x64xf32>
    %c8 = arith.constant 8 : index
    %58 = memref.load %arg3[%c8] : memref<9xf32, #tpu.memory_space<smem>>
    %59 = vector.extract_strided_slice %6 {offsets = [2, 0], sizes = [1, 64], strides = [1, 1]} : vector<3x64xf32> to vector<1x64xf32>
    %60 = vector.broadcast %58 : f32 to vector<1x64xf32>
    %61 = arith.mulf %60, %59 : vector<1x64xf32>
    %62 = arith.addf %57, %61 : vector<1x64xf32>
    %c2_14 = arith.constant 2 : index
    %63 = memref.load %arg4[%c2_14] : memref<3xf32, #tpu.memory_space<smem>>
    %64 = vector.broadcast %63 : f32 to vector<1x64xf32>
    %65 = arith.addf %62, %64 : vector<1x64xf32>
    %66 = tpu.concatenate %31, %48, %65 in 0 : vector<1x64xf32>, vector<1x64xf32>, vector<1x64xf32> -> vector<3x64xf32>
    %67 = vector.broadcast %14 : vector<3x1xf32> to vector<3x64xf32>
    %68 = arith.addf %66, %67 : vector<3x64xf32>
    %69 = arith.truncf %68 : vector<3x64xf32> to vector<3x64xbf16>
    %c0_15 = arith.constant 0 : index
    %c0_16 = arith.constant 0 : index
    %70 = vector.load %arg2[%c0_15, %c0_16] : memref<64x512xbf16, #tpu.memory_space<vmem>>, vector<64x512xbf16>
    %cst_17 = arith.constant dense<0.000000e+00> : vector<3x512xf32>
    %71 = tpu.matmul %69, %70, %cst_17 {dimension_numbers = #tpu.dot_dimension_numbers<[1], [0], [0], [1], [0, 0, 1, 1], [], []>} : vector<3x64xbf16>, vector<64x512xbf16>, vector<3x512xf32> -> vector<3x512xf32>
    %72 = vector.extract_strided_slice %71 {offsets = [0, 0], sizes = [3, 256], strides = [1, 1]} : vector<3x512xf32> to vector<3x256xf32>
    %73 = vector.extract_strided_slice %71 {offsets = [0, 256], sizes = [3, 256], strides = [1, 1]} : vector<3x512xf32> to vector<3x256xf32>
    %c0_18 = arith.constant 0 : index
    %74 = memref.load %arg5[%c0_18] : memref<9xf32, #tpu.memory_space<smem>>
    %75 = vector.extract_strided_slice %72 {offsets = [0, 0], sizes = [1, 256], strides = [1, 1]} : vector<3x256xf32> to vector<1x256xf32>
    %76 = vector.broadcast %74 : f32 to vector<1x256xf32>
    %77 = arith.mulf %76, %75 : vector<1x256xf32>
    %c1_19 = arith.constant 1 : index
    %78 = memref.load %arg5[%c1_19] : memref<9xf32, #tpu.memory_space<smem>>
    %79 = vector.extract_strided_slice %72 {offsets = [1, 0], sizes = [1, 256], strides = [1, 1]} : vector<3x256xf32> to vector<1x256xf32>
    %80 = vector.broadcast %78 : f32 to vector<1x256xf32>
    %81 = arith.mulf %80, %79 : vector<1x256xf32>
    %82 = arith.addf %77, %81 : vector<1x256xf32>
    %c2_20 = arith.constant 2 : index
    %83 = memref.load %arg5[%c2_20] : memref<9xf32, #tpu.memory_space<smem>>
    %84 = vector.extract_strided_slice %72 {offsets = [2, 0], sizes = [1, 256], strides = [1, 1]} : vector<3x256xf32> to vector<1x256xf32>
    %85 = vector.broadcast %83 : f32 to vector<1x256xf32>
    %86 = arith.mulf %85, %84 : vector<1x256xf32>
    %87 = arith.addf %82, %86 : vector<1x256xf32>
    %c0_21 = arith.constant 0 : index
    %88 = memref.load %arg6[%c0_21] : memref<9xf32, #tpu.memory_space<smem>>
    %89 = vector.extract_strided_slice %10 {offsets = [0, 0], sizes = [1, 256], strides = [1, 1]} : vector<3x256xf32> to vector<1x256xf32>
    %90 = vector.broadcast %88 : f32 to vector<1x256xf32>
    %91 = arith.mulf %90, %89 : vector<1x256xf32>
    %92 = arith.addf %87, %91 : vector<1x256xf32>
    %c1_22 = arith.constant 1 : index
    %93 = memref.load %arg6[%c1_22] : memref<9xf32, #tpu.memory_space<smem>>
    %94 = vector.extract_strided_slice %10 {offsets = [1, 0], sizes = [1, 256], strides = [1, 1]} : vector<3x256xf32> to vector<1x256xf32>
    %95 = vector.broadcast %93 : f32 to vector<1x256xf32>
    %96 = arith.mulf %95, %94 : vector<1x256xf32>
    %97 = arith.addf %92, %96 : vector<1x256xf32>
    %c2_23 = arith.constant 2 : index
    %98 = memref.load %arg6[%c2_23] : memref<9xf32, #tpu.memory_space<smem>>
    %99 = vector.extract_strided_slice %10 {offsets = [2, 0], sizes = [1, 256], strides = [1, 1]} : vector<3x256xf32> to vector<1x256xf32>
    %100 = vector.broadcast %98 : f32 to vector<1x256xf32>
    %101 = arith.mulf %100, %99 : vector<1x256xf32>
    %102 = arith.addf %97, %101 : vector<1x256xf32>
    %c0_24 = arith.constant 0 : index
    %103 = memref.load %arg7[%c0_24] : memref<3xf32, #tpu.memory_space<smem>>
    %104 = vector.broadcast %103 : f32 to vector<1x256xf32>
    %105 = arith.addf %102, %104 : vector<1x256xf32>
    %c3_25 = arith.constant 3 : index
    %106 = memref.load %arg5[%c3_25] : memref<9xf32, #tpu.memory_space<smem>>
    %107 = vector.extract_strided_slice %72 {offsets = [0, 0], sizes = [1, 256], strides = [1, 1]} : vector<3x256xf32> to vector<1x256xf32>
    %108 = vector.broadcast %106 : f32 to vector<1x256xf32>
    %109 = arith.mulf %108, %107 : vector<1x256xf32>
    %c4_26 = arith.constant 4 : index
    %110 = memref.load %arg5[%c4_26] : memref<9xf32, #tpu.memory_space<smem>>
    %111 = vector.extract_strided_slice %72 {offsets = [1, 0], sizes = [1, 256], strides = [1, 1]} : vector<3x256xf32> to vector<1x256xf32>
    %112 = vector.broadcast %110 : f32 to vector<1x256xf32>
    %113 = arith.mulf %112, %111 : vector<1x256xf32>
    %114 = arith.addf %109, %113 : vector<1x256xf32>
    %c5_27 = arith.constant 5 : index
    %115 = memref.load %arg5[%c5_27] : memref<9xf32, #tpu.memory_space<smem>>
    %116 = vector.extract_strided_slice %72 {offsets = [2, 0], sizes = [1, 256], strides = [1, 1]} : vector<3x256xf32> to vector<1x256xf32>
    %117 = vector.broadcast %115 : f32 to vector<1x256xf32>
    %118 = arith.mulf %117, %116 : vector<1x256xf32>
    %119 = arith.addf %114, %118 : vector<1x256xf32>
    %c3_28 = arith.constant 3 : index
    %120 = memref.load %arg6[%c3_28] : memref<9xf32, #tpu.memory_space<smem>>
    %121 = vector.extract_strided_slice %10 {offsets = [0, 0], sizes = [1, 256], strides = [1, 1]} : vector<3x256xf32> to vector<1x256xf32>
    %122 = vector.broadcast %120 : f32 to vector<1x256xf32>
    %123 = arith.mulf %122, %121 : vector<1x256xf32>
    %124 = arith.addf %119, %123 : vector<1x256xf32>
    %c4_29 = arith.constant 4 : index
    %125 = memref.load %arg6[%c4_29] : memref<9xf32, #tpu.memory_space<smem>>
    %126 = vector.extract_strided_slice %10 {offsets = [1, 0], sizes = [1, 256], strides = [1, 1]} : vector<3x256xf32> to vector<1x256xf32>
    %127 = vector.broadcast %125 : f32 to vector<1x256xf32>
    %128 = arith.mulf %127, %126 : vector<1x256xf32>
    %129 = arith.addf %124, %128 : vector<1x256xf32>
    %c5_30 = arith.constant 5 : index
    %130 = memref.load %arg6[%c5_30] : memref<9xf32, #tpu.memory_space<smem>>
    %131 = vector.extract_strided_slice %10 {offsets = [2, 0], sizes = [1, 256], strides = [1, 1]} : vector<3x256xf32> to vector<1x256xf32>
    %132 = vector.broadcast %130 : f32 to vector<1x256xf32>
    %133 = arith.mulf %132, %131 : vector<1x256xf32>
    %134 = arith.addf %129, %133 : vector<1x256xf32>
    %c1_31 = arith.constant 1 : index
    %135 = memref.load %arg7[%c1_31] : memref<3xf32, #tpu.memory_space<smem>>
    %136 = vector.broadcast %135 : f32 to vector<1x256xf32>
    %137 = arith.addf %134, %136 : vector<1x256xf32>
    %c6_32 = arith.constant 6 : index
    %138 = memref.load %arg5[%c6_32] : memref<9xf32, #tpu.memory_space<smem>>
    %139 = vector.extract_strided_slice %72 {offsets = [0, 0], sizes = [1, 256], strides = [1, 1]} : vector<3x256xf32> to vector<1x256xf32>
    %140 = vector.broadcast %138 : f32 to vector<1x256xf32>
    %141 = arith.mulf %140, %139 : vector<1x256xf32>
    %c7_33 = arith.constant 7 : index
    %142 = memref.load %arg5[%c7_33] : memref<9xf32, #tpu.memory_space<smem>>
    %143 = vector.extract_strided_slice %72 {offsets = [1, 0], sizes = [1, 256], strides = [1, 1]} : vector<3x256xf32> to vector<1x256xf32>
    %144 = vector.broadcast %142 : f32 to vector<1x256xf32>
    %145 = arith.mulf %144, %143 : vector<1x256xf32>
    %146 = arith.addf %141, %145 : vector<1x256xf32>
    %c8_34 = arith.constant 8 : index
    %147 = memref.load %arg5[%c8_34] : memref<9xf32, #tpu.memory_space<smem>>
    %148 = vector.extract_strided_slice %72 {offsets = [2, 0], sizes = [1, 256], strides = [1, 1]} : vector<3x256xf32> to vector<1x256xf32>
    %149 = vector.broadcast %147 : f32 to vector<1x256xf32>
    %150 = arith.mulf %149, %148 : vector<1x256xf32>
    %151 = arith.addf %146, %150 : vector<1x256xf32>
    %c6_35 = arith.constant 6 : index
    %152 = memref.load %arg6[%c6_35] : memref<9xf32, #tpu.memory_space<smem>>
    %153 = vector.extract_strided_slice %10 {offsets = [0, 0], sizes = [1, 256], strides = [1, 1]} : vector<3x256xf32> to vector<1x256xf32>
    %154 = vector.broadcast %152 : f32 to vector<1x256xf32>
    %155 = arith.mulf %154, %153 : vector<1x256xf32>
    %156 = arith.addf %151, %155 : vector<1x256xf32>
    %c7_36 = arith.constant 7 : index
    %157 = memref.load %arg6[%c7_36] : memref<9xf32, #tpu.memory_space<smem>>
    %158 = vector.extract_strided_slice %10 {offsets = [1, 0], sizes = [1, 256], strides = [1, 1]} : vector<3x256xf32> to vector<1x256xf32>
    %159 = vector.broadcast %157 : f32 to vector<1x256xf32>
    %160 = arith.mulf %159, %158 : vector<1x256xf32>
    %161 = arith.addf %156, %160 : vector<1x256xf32>
    %c8_37 = arith.constant 8 : index
    %162 = memref.load %arg6[%c8_37] : memref<9xf32, #tpu.memory_space<smem>>
    %163 = vector.extract_strided_slice %10 {offsets = [2, 0], sizes = [1, 256], strides = [1, 1]} : vector<3x256xf32> to vector<1x256xf32>
    %164 = vector.broadcast %162 : f32 to vector<1x256xf32>
    %165 = arith.mulf %164, %163 : vector<1x256xf32>
    %166 = arith.addf %161, %165 : vector<1x256xf32>
    %c2_38 = arith.constant 2 : index
    %167 = memref.load %arg7[%c2_38] : memref<3xf32, #tpu.memory_space<smem>>
    %168 = vector.broadcast %167 : f32 to vector<1x256xf32>
    %169 = arith.addf %166, %168 : vector<1x256xf32>
    %170 = tpu.concatenate %105, %137, %169 in 0 : vector<1x256xf32>, vector<1x256xf32>, vector<1x256xf32> -> vector<3x256xf32>
    %171 = arith.addf %73, %170 : vector<3x256xf32>
    %c0_39 = arith.constant 0 : index
    %c0_40 = arith.constant 0 : index
    %c0_41 = arith.constant 0 : index
    %172 = vector.load %arg10[%c0_39, %c0_40, %c0_41] : memref<1x3x256xf32, #tpu.memory_space<vmem>>, vector<1x3x256xf32>
    %173 = vector.shape_cast %172 : vector<1x3x256xf32> to vector<3x256xf32>
    %174 = vector.shape_cast %171 : vector<3x256xf32> to vector<1x3x256xf32>
    tpu.vector_store %arg10[%c0_39, %c0_40, %c0_41], %174 {strides = array<i32>} : memref<1x3x256xf32, #tpu.memory_space<vmem>>, vector<1x3x256xf32>,
    return
  }
  func.func @transform_0(%arg0: i32) -> (i32, i32) {
    %c0_i32 = arith.constant 0 : i32
    %c0_i32_0 = arith.constant 0 : i32
    %c0_i32_1 = arith.constant 0 : i32
    return %c0_i32, %c0_i32_0 : i32, i32
  }
  func.func @transform_1(%arg0: i32) -> (i32, i32) {
    %c0_i32 = arith.constant 0 : i32
    %c0_i32_0 = arith.constant 0 : i32
    %c0_i32_1 = arith.constant 0 : i32
    return %c0_i32, %c0_i32_0 : i32, i32
  }
  func.func @transform_2(%arg0: i32) -> i32 {
    %c0_i32 = arith.constant 0 : i32
    %c0_i32_0 = arith.constant 0 : i32
    return %c0_i32 : i32
  }
  func.func @transform_3(%arg0: i32) -> i32 {
    %c0_i32 = arith.constant 0 : i32
    %c0_i32_0 = arith.constant 0 : i32
    return %c0_i32 : i32
  }
  func.func @transform_4(%arg0: i32) -> i32 {
    %c0_i32 = arith.constant 0 : i32
    %c0_i32_0 = arith.constant 0 : i32
    return %c0_i32 : i32
  }
  func.func @transform_5(%arg0: i32) -> i32 {
    %c0_i32 = arith.constant 0 : i32
    %c0_i32_0 = arith.constant 0 : i32
    return %c0_i32 : i32
  }
  func.func @transform_6(%arg0: i32) -> i32 {
    %c0_i32 = arith.constant 0 : i32
    %c0_i32_0 = arith.constant 0 : i32
    return %c0_i32 : i32
  }
  func.func @transform_7(%arg0: i32) -> (i32, i32, i32) {
    %c0_i32 = arith.constant 0 : i32
    %c0_i32_0 = arith.constant 0 : i32
    %c0_i32_1 = arith.constant 0 : i32
    return %arg0, %c0_i32, %c0_i32_0 : i32, i32, i32
  }
  func.func @transform_8(%arg0: i32) -> (i32, i32, i32) {
    %c0_i32 = arith.constant 0 : i32
    %c0_i32_0 = arith.constant 0 : i32
    %c0_i32_1 = arith.constant 0 : i32
    return %arg0, %c0_i32, %c0_i32_0 : i32, i32, i32
  }
  func.func @transform_9(%arg0: i32) -> (i32, i32, i32) {
    %c0_i32 = arith.constant 0 : i32
    %c0_i32_0 = arith.constant 0 : i32
    %c0_i32_1 = arith.constant 0 : i32
    return %arg0, %c0_i32, %c0_i32_0 : i32, i32, i32
  }
}

</mosaic_0001>

<bundles_post_ra>
// kernel: lapstyle_forward.1
= control target key start
LH: loop header
LB: loop body
LE: loop exit
PB: predicated region body
PF: predicated region fallthrough
CT: control target
= control target key end

     0   :  { %s2118_s0 = inlined_call_operand.vmem [shape: bf16[256,64], index: 0, kind: input, shape index: {}]   ;;  %s2119_s1 = inlined_call_operand.vmem [shape: bf16[64,512], index: 1, kind: input, shape index: {}]   ;;  %s2120_s2 = inlined_call_operand.vmem [shape: f32[9], index: 2, kind: input, shape index: {}]   ;;  %s2121_s3 = inlined_call_operand.vmem [shape: f32[3], index: 3, kind: input, shape index: {}]   ;;  %s2122_s4 = inlined_call_operand.vmem [shape: f32[9], index: 4, kind: input, shape index: {}]   ;;  %s2123_s5 = inlined_call_operand.vmem [shape: f32[9], index: 5, kind: input, shape index: {}]   ;;  %s2124_s6 = inlined_call_operand.hbm [shape: f32[3], index: 6, kind: input, shape index: {}]   ;;  %s2125_s7 = inlined_call_operand.vmem [shape: f32[2,3,256], index: 7, kind: input, shape index: {}]   ;;  %s2126_s8 = inlined_call_operand.vmem [shape: f32[2,3,256], index: 8, kind: input, shape index: {}]   ;;  %s2127_s9 = inlined_call_operand.vmem [shape: f32[2,3,256], index: 9, kind: output, shape index: {}]  }
   0x1   :  { %2128 = sst [smem:[#allocation15_spill]] %s2118_s0 }
   0x2   :  { %14 = vsyncpa [#allocation4], 0 }
   0x3   :  { %15 = vsyncpa [#allocation6], 0 }
   0x4   :  { %16 = vsyncpa [#allocation9], 0 }
   0x5   :  { %17 = vsyncpa [#allocation3], 0  ;;  %s1710_s30 = smov 0  }
   0x6 LB: > { %s283_s12 = sshll.u32 %s2121_s3, 4  ;;  %s1719_s13 = sadd.s32 4294967295, %s1652_s30   ;;  %s1652_s30 = sphi %s1710_s30, %s23_s30   ;;  %s284_s12 = int_to_ptr.vmem [resolvable:$true] %s283_s12 }
   0x7   : > { %p1340_p0 = scmp.ge.s32.totalorder %s1652_s30, 1  ;;  %p253_p1 = scmp.lt.s32.totalorder %s1652_s30, 3 }
   0x8   : > { %p1493_p2 = scmp.eq.s32.totalorder %s1719_s13, 0  ;;  %s272_s17 = sshll.u32 %s2120_s2, 4  ;;  %s1731_s17 = int_to_ptr.vmem [resolvable:$true] %s272_s17 }
   0x9   : > { %p1724_p3 = pnand %p1340_p0, %p253_p1  ;;  %s294_s20 = sshll.u32 %s2122_s4, 4  ;;  %s1738_s20 = int_to_ptr.vmem [resolvable:$true] %s294_s20 }
   0xa   : > { %s305_s24 = sshll.u32 %s2123_s5, 4  ;;  %s1559_s25 = scalar_lea.vmem %s284_s12, 16  ;;  %s1749_s24 = int_to_ptr.vmem [resolvable:$true] %s305_s24 }
   0xb   : > { %p1477_p4 = pneg %p1724_p3  ;;  %p1560_p6 = scmp.ne.s32.totalorder %s284_s12, %s1559_s25 }
   0xc   : > { %p1567_p10 = scmp.lt.s32.totalorder %s284_s12, %s284_s12  ;;  %p1568_p11 = scmp.lt.s32.totalorder %s1559_s25, %s1559_s25 }
   0xd   : > { %p1742_p5 = pnand %p1493_p2, %p1477_p4 }
   0xe   : > { %p1569_p12 = por %p1568_p11, %p1567_p10 }
   0xf   : > { %p1561_p7 = pneg %p1742_p5 }
  0x11   : > { %p1562_p8 = pnand %p1561_p7, %p1560_p6 }
  0x13   : > { %p1563_p9 = pneg %p1562_p8 }
  0x15   : > { %p1570_p13 = pnand %p1569_p12, %p1563_p9 }
  0x17   : > { %1573 = shalt.err (!%p1570_p13)
}
  0x18   : > { %s1654_s26 = smov [#allocation5]   ;;  %s1574_s27 = scalar_lea.vmem %s1731_s17, 16 }
  0x19   : > { %1483 = dma.vmem_to_smem (!%p1742_p5), %s284_s12, 16, %s1654_s26, [#allocation6]  }
  0x1a   : > { %p1575_p0 = scmp.ne.s32.totalorder %s1731_s17, %s1574_s27  ;;  %p1582_p6 = scmp.lt.s32.totalorder %s1731_s17, %s1731_s17 }
  0x1b   : > { %p1583_p8 = scmp.lt.s32.totalorder %s1574_s27, %s1574_s27 }
  0x1c   : > { %p1577_p1 = pnand %p1575_p0, %p1561_p7 }
  0x1d   : > { %p1584_p10 = por %p1583_p8, %p1582_p6 }
  0x1e   : > { %p1578_p4 = pneg %p1577_p1 }
  0x20   : > { %p1585_p9 = pnand %p1584_p10, %p1578_p4 }
  0x22   : > { %1588 = shalt.err (!%p1585_p9)
}
  0x23   : > { %s1655_s28 = smov [#allocation2]   ;;  %s1589_s29 = scalar_lea.vmem %s1738_s20, 16 }
  0x24   : > { %1480 = dma.vmem_to_smem (!%p1742_p5), %s1731_s17, 16, %s1655_s28, [#allocation4]  }
  0x25   : > { %p1590_p11 = scmp.ne.s32.totalorder %s1738_s20, %s1589_s29  ;;  %p1597_p0 = scmp.lt.s32.totalorder %s1738_s20, %s1738_s20 }
  0x26   : > { %p1598_p1 = scmp.lt.s32.totalorder %s1589_s29, %s1589_s29 }
  0x27   : > { %p1592_p12 = pnand %p1590_p11, %p1561_p7 }
  0x28   : > { %p1599_p4 = por %p1598_p1, %p1597_p0 }
  0x29   : > { %p1593_p13 = pneg %p1592_p12 }
  0x2b   : > { %p1600_p6 = pnand %p1599_p4, %p1593_p13 }
  0x2d   : > { %1603 = shalt.err (!%p1600_p6)
}
  0x2e   : > { %s1656_s10 = smov [#allocation7]   ;;  %s1604_s11 = scalar_lea.vmem %s1749_s24, 16 }
  0x2f   : > { %1486 = dma.vmem_to_smem (!%p1742_p5), %s1738_s20, 16, %s1656_s10, [#allocation6]  }
  0x30   : > { %p1605_p8 = scmp.ne.s32.totalorder %s1749_s24, %s1604_s11  ;;  %p1612_p11 = scmp.lt.s32.totalorder %s1749_s24, %s1749_s24 }
  0x31   : > { %p1613_p12 = scmp.lt.s32.totalorder %s1604_s11, %s1604_s11 }
  0x32   : > { %p1607_p10 = pnand %p1605_p8, %p1561_p7 }
  0x33   : > { %p1614_p13 = por %p1613_p12, %p1612_p11 }
  0x34   : > { %p1608_p9 = pneg %p1607_p10 }
  0x36   : > { %p1615_p0 = pnand %p1614_p13, %p1608_p9 }
  0x38   : > { %1618 = shalt.err (!%p1615_p0)
}
  0x39   : > { %s1657_s12 = smov [#allocation8]   ;;  %s1658_s15 = smov [#allocation10]  }
  0x3a   : > { %1489 = dma.vmem_to_smem (!%p1742_p5), %s1749_s24, 16, %s1657_s12, [#allocation9]  }
  0x3b   : > { %1492 = dma.hbm_to_smem (!%p1742_p5), %s2124_s6, 16, %s1658_s15, [#allocation3]  }
  0x3c   : > { %343 = sbr.rel (%p1724_p3) target bundleno = 553 (0x229), region = 56 }
  0x41   : > { %1635 = dma.done.wait (%p1493_p2), [#allocation4], 16  }
  0x42   : > { %1637 = vsyncadd (%p1493_p2), [#allocation4], 4294967280 }
  0x43   : > { %1639 = dma.done.wait (%p1493_p2), [#allocation6], 32  }
  0x44   : > { %1641 = vsyncadd (%p1493_p2), [#allocation6], 4294967264 }
  0x45   : > { %1643 = dma.done.wait (%p1493_p2), [#allocation9], 16  }
  0x46   : > { %1645 = vsyncadd (%p1493_p2), [#allocation9], 4294967280 }
  0x47   : > { %1647 = dma.done.wait (%p1493_p2), [#allocation3], 16  }
  0x48   : > { %1649 = vsyncadd (%p1493_p2), [#allocation3], 4294967280 }
  0x49   : > { %365 = sfence }
  0x4a   : > { %s2131_s0 = sld [smem:[#allocation15_spill]]  ;;  %p401_p3 = scmp.lt.s32.totalorder %s1719_s13, 1  ;;  %vm694_vm0 = vcmask 1042432   ;;  %v1535_v17 = vld [vmem:[%s2119_s1 + $0x6c] ss:$16 sps:$4 sm:$0xff]   ;;  %v1659_v34 = vmov 0  }
  0x4b   : > { %v1537_v18 = vld [vmem:[%s2119_s1 + $0x68] ss:$16 sps:$4 sm:$0xff]   ;;  %v1538_v20 = vld [vmem:[%s2119_s1 + $0x4c] ss:$16 sps:$4 sm:$0xff]   ;;  %653 = vmatprep.subr.bf16.mxu1 %v1535_v17  ;;  %v1549_v33 = vld [vmem:[%s2119_s1 + $0x64] ss:$16 sps:$4 sm:$0xff]   ;;  %677 = vmatprep.mubr.bf16.mxu1 %v1659_v34 }
  0x4c   : > { %s2133_s13 = smov (!%p401_p3, %s1719_s13), 1  ;;  %v1540_v23 = vld [vmem:[%s2119_s1 + $0x48] ss:$16 sps:$4 sm:$0xff]   ;;  %654 = vmatpush1.bf16.msra.mxu1 %v1537_v18  ;;  %v1541_v25 = vld [vmem:[%s2119_s1 + $0x2c] ss:$16 sps:$4 sm:$0xff]   ;;  %s1906_s14 = sld [smem:[#allocation2]] }
  0x4d   : > { %s1834_s11 = sshll.u32 %s2133_s13, 3  ;;  %655 = vmatprep.subr.bf16.mxu1 %v1538_v20  ;;  %v1543_v30 = vld [vmem:[%s2119_s1 + $0x28] ss:$16 sps:$4 sm:$0xff]   ;;  %v1544_v31 = vld [vmem:[%s2119_s1 + $0xc] ss:$16 sps:$4 sm:$0xff]   ;;  %s1384_s18 = sld [smem:[#allocation2 + $0x1]] }
  0x4e   : > { %s405_s19 = scalar_lea.vmem %s2125_s7, %s1834_s11  ;;  %s410_s13 = scalar_lea.vmem %s2126_s8, %s1834_s11  ;;  %v1546_v32 = vld [vmem:[%s2119_s1 + $0x8] ss:$16 sps:$4 sm:$0xff]   ;;  %vm641_vm1 = vcmask 523264   ;;  %v1547_v43 = vld [vmem:[%s2119_s1 + $0x60] ss:$16 sps:$4 sm:$0xff]   ;;  %vm768_vm2 = vcmask 1040384  }
  0x4f   : > { %v1856_v11 = vld [vmem:[%s405_s19] sm:$0x77]  ;;  %s1385_s19 = sld [smem:[#allocation2 + $0x2]]  ;;  %vm770_vm3 = vcmask 1041408  }
  0x50   : > { %v1517_v0 = vld [vmem:[%s2131_s0 + $0x78] sm:$0xff]   ;;  %v1519_v2 = vld [vmem:[%s2131_s0 + $0x70] sm:$0xff]   ;;  %v1521_v4 = vld [vmem:[%s2131_s0 + $0x68] sm:$0xff]   ;;  %v420_v14 = vcombine.high %v1856_v11, %v1856_v11  ;;  %656 = vmatpush1.bf16.msra.mxu1 %v1540_v23  ;;  %v422_v29 = vpack.c.bf16 %v1856_v11, %v1856_v11  ;;  %s1387_s20 = sld [smem:[#allocation2 + $0x4]] }
  0x51   : > { %v1518_v1 = vld [vmem:[%s2131_s0 + $0x38] sm:$0xff]   ;;  %1435 = vmatprep.subr.bf16.mxu0 %v1517_v0  ;;  %v1520_v3 = vld [vmem:[%s2131_s0 + $0x30] sm:$0xff]   ;;  %v1522_v5 = vld [vmem:[%s2131_s0 + $0x28] sm:$0xff]   ;;  %657 = vmatprep.subr.bf16.mxu1 %v1541_v25  ;;  %s1388_s21 = sld [smem:[#allocation2 + $0x5]] }
  0x52   : > { %1436 = vmatpush3.bf16.msra.mxu0 %v1518_v1  ;;  %v1523_v6 = vld [vmem:[%s2131_s0 + $0x60] sm:$0xff]   ;;  %v1525_v8 = vld [vmem:[%s2131_s0 + $0x58] sm:$0xff]   ;;  %v1527_v10 = vld [vmem:[%s2131_s0 + $0x50] sm:$0xff]   ;;  %v423_v21 = vpack.c.bf16 %v420_v14, %v420_v14  ;;  %s1910_s22 = sld [smem:[#allocation2 + $0x8]]  ;;  %v703_v44 = vstv %s1906_s14 }
  0x53   : > { %1437 = vmatprep.subr.bf16.mxu0 %v1519_v2  ;;  %v1524_v7 = vld [vmem:[%s2131_s0 + $0x20] sm:$0xff]   ;;  %v1526_v9 = vld [vmem:[%s2131_s0 + $0x18] sm:$0xff]   ;;  %v1528_v13 = vld [vmem:[%s2131_s0 + $0x10] sm:$0xff]   ;;  %s1912_s23 = sld [smem:[#allocation2 + $0x3]]  ;;  %v706_v37 = vstv %s1384_s18 }
  0x54   : > { %v418_v12 = vld [vmem:[%s410_s13] sm:$0x77]  ;;  %v1529_v19 = vld [vmem:[%s2131_s0 + $0x48] sm:$0xff]   ;;  %584 = vmatprep.mubr.bf16.mxu0 %v423_v21  ;;  %658 = vmatpush1.bf16.msra.mxu1 %v1543_v30  ;;  %s1908_s13 = sld [smem:[#allocation2 + $0x7]] }
  0x55   : > { %v692_v15 = vcombine.high %v418_v12, %v418_v12  ;;  %v695_v16 = vsel %vm694_vm0, %v418_v12, 0.0  ;;  %v1530_v26 = vld [vmem:[%s2131_s0 + $0x8] sm:$0xff]   ;;  %v1531_v27 = vld [vmem:[%s2131_s0 + $0x40] sm:$0xff]   ;;  %659 = vmatprep.subr.bf16.mxu1 %v1544_v31  ;;  %s1914_s24 = sld [smem:[#allocation2 + $0x6]]  ;;  %v713_v39 = vstv %s1385_s19 }
  0x56   : > { %1438 = vmatpush3.bf16.msra.mxu0 %v1520_v3  ;;  %v1532_v28 = vld [vmem:[%s2131_s0] sm:$0xff]   ;;  %v726_v40 = vstv %s1387_s20  ;;  %s1916_s25 = sld [smem:[#allocation5 + $0x1]] }
  0x57   : > { %1439 = vmatprep.subr.bf16.mxu0 %v1521_v4  ;;  %v696_v22 = vsel %vm694_vm0, %v692_v15, 0.0  ;;  %v733_v41 = vstv %s1388_s21  ;;  %s1924_s28 = sld [smem:[#allocation5 + $0x2]]  ;;  %v1552_v48 = vld [vmem:[%s2119_s1 + $0x44] ss:$16 sps:$4 sm:$0xff]   ;;  %v1550_v60 = vld [vmem:[%s2119_s1 + $0x40] ss:$16 sps:$4 sm:$0xff]  }
  0x58   : > { %v697_v24 = vadd.f32 %v696_v22, %v695_v16  ;;  %660 = vmatpush1.bf16.msra.mxu1 %v1546_v32  ;;  %v753_v46 = vstv %s1910_s22  ;;  %s1929_s12 = sld [smem:[#allocation5]]  ;;  %v1555_v63 = vld [vmem:[%s2119_s1 + $0x24] ss:$16 sps:$4 sm:$0xff]  }
  0x59   : > { %881 = vmatprep.subr.bf16.mxu1 %v1549_v33  ;;  %v723_v50 = vstv %s1912_s23  ;;  %s1956_s23 = sld [smem:[#allocation8]] }
  0x5a   : > { %1440 = vmatpush3.bf16.msra.mxu0 %v1522_v5  ;;  %698 = vadd.xlane.f32.xlu0 %v697_v24  ;;  %v746_v45 = vstv %s1908_s13  ;;  %s1962_s26 = sld [smem:[#allocation8 + $0x3]] }
  0x5b   : > { %1441 = vmatprep.subr.bf16.mxu0 %v1523_v6  ;;  %v743_v55 = vstv %s1914_s24  ;;  %s1958_s24 = sld [smem:[#allocation8 + $0x1]] }
  0x5c   : > { %v740_v6 = vstv %s1916_s25  ;;  %s1960_s25 = sld [smem:[#allocation8 + $0x2]] }
  0x5d   : > { %s1964_s27 = sld [smem:[#allocation8 + $0x4]] }
  0x5e   : > { %1442 = vmatpush3.bf16.msra.mxu0 %v1524_v7  ;;  %v720_v15 = vstv %s1929_s12  ;;  %s1968_s29 = sld [smem:[#allocation8 + $0x6]] }
  0x5f   : > { %1443 = vmatprep.subr.bf16.mxu0 %v1525_v8  ;;  %s1970_s10 = sld [smem:[#allocation8 + $0x7]] }
  0x60   : > { %s1972_s12 = sld [smem:[#allocation8 + $0x8]] }
  0x61   : > { %s1974_s15 = sld [smem:[#allocation7]] }
  0x62   : > { %1444 = vmatpush3.bf16.msra.mxu0 %v1526_v9  ;;  %v1553_v9 = vld [vmem:[%s2119_s1 + $0x20] ss:$16 sps:$4 sm:$0xff]   ;;  %s1976_s16 = sld [smem:[#allocation7 + $0x1]] }
  0x63   : > { %1445 = vmatprep.subr.bf16.mxu0 %v1527_v10  ;;  %s1978_s17 = sld [smem:[#allocation7 + $0x2]] }
  0x64   : > { %s1980_s14 = sld [smem:[#allocation7 + $0x3]] }
  0x65   : > { %s1982_s18 = sld [smem:[#allocation7 + $0x4]] }
  0x66   : > { %1446 = vmatpush3.bf16.msra.mxu0 %v1528_v13  ;;  %v760_v13 = vstv %s1924_s28  ;;  %s1966_s28 = sld [smem:[#allocation8 + $0x5]] }
  0x67   : > { %1447 = vmatprep.subr.bf16.mxu0 %v1529_v19  ;;  %s1984_s19 = sld [smem:[#allocation7 + $0x5]] }
  0x68   : > { %s1986_s20 = sld [smem:[#allocation7 + $0x6]] }
  0x69   : > { %s1988_s21 = sld [smem:[#allocation7 + $0x7]] }
  0x6a   : > { %1448 = vmatpush3.bf16.msra.mxu0 %v1530_v26  ;;  %s1990_s13 = sld [smem:[#allocation7 + $0x8]] }
  0x6b   : > { %1449 = vmatprep.subr.bf16.mxu0 %v1531_v27  ;;  %s1993_s22 = sld [smem:[#allocation10 + $0x1]] }
  0x6c   : > { %s2001_s0 = sld [smem:[#allocation10 + $0x2]] }
  0x6e   : > { %1450 = vmatpush3.bf16.msra.mxu0 %v1532_v28 }
  0x6f   : > { %922 = vmatprep.subr.bf16.mxu0 %v1535_v17  ;;  %v1558_v17 = vld [vmem:[%s2119_s1 + $0x4] ss:$16 sps:$4 sm:$0xff]  }
  0x71   : > { %585 = vmatmul.mubr.bf16.vlgmr.msra.gmra.mxu0 %v422_v29  ;;  %v987_v29 = vlaneseq }
  0x72   : > { %923 = vmatpush1.bf16.msra.mxu0 %v1537_v18  ;;  %946 = vmatprep.mubr.bf16.mxu0 %v1659_v34 }
  0x73   : > { %924 = vmatprep.subr.bf16.mxu0 %v1538_v20  ;;  %v988_v33 = vshrl.u32 %v987_v29, 7 }
  0x76   : > { %925 = vmatpush1.bf16.msra.mxu0 %v1540_v23  ;;  %v1556_v23 = vld [vmem:[%s2119_s1] ss:$16 sps:$4 sm:$0xff]  }
  0x77   : > { %926 = vmatprep.subr.bf16.mxu0 %v1541_v25 }
  0x7a   : > { %927 = vmatpush1.bf16.msra.mxu0 %v1543_v30 }
  0x7b   : > { %928 = vmatprep.subr.bf16.mxu0 %v1544_v31 }
  0x7e   : > { %929 = vmatpush1.bf16.msra.mxu0 %v1546_v32 }
  0xe3   : > { %v699_v14 = vpop.xlane.xlu0 %698 }
  0xe4   : > { %v701_v20 = vmul.f32 0.00390625, %v699_v14 }
 0x131   : > { %v1451_v35 = vpop.f32.mrf.mxu0 }
 0x133   : > { %v1452_v36 = vpop.f32.mrf.mxu0 }
 0x134   : > { %v1453_v38 = vadd.f32 %v1452_v36, %v1451_v35  ;;  %v984_v36 = vstv %s1956_s23  ;;  %s2073_s23 = sld [smem:[#allocation10]] }
 0x135   : > { %v1454_v42 = vpop.f32.mrf.mxu0 }
 0x136   : > { %v592_v47 = vpack.c.bf16 %v1453_v38, %v1453_v38  ;;  %v707_v49 = vmul.f32 %v1453_v38, %v706_v37  ;;  %v714_v52 = vmul.f32 %v1453_v38, %v713_v39  ;;  %v727_v53 = vmul.f32 %v1453_v38, %v726_v40 }
 0x137   : > { %v1455_v51 = vpop.f32.mrf.mxu0  ;;  %v734_v54 = vmul.f32 %v1453_v38, %v733_v41  ;;  %v704_v56 = vmul.f32 %v1453_v38, %v703_v44  ;;  %v747_v58 = vmul.f32 %v1453_v38, %v746_v45  ;;  %v754_v59 = vmul.f32 %v1453_v38, %v753_v46 }
 0x138   : > { %1383 = vmatmul.mubr.msk.bf16.vlgmr.msra.gmra.mxu1 %vm641_vm1, %v592_v47  ;;  %v709_v57 = vrot.slane %v707_v49, 1  ;;  %v724_v61 = vmul.f32 %v1453_v38, %v723_v50  ;;  %v729_v62 = vrot.slane %v727_v53, 1  ;;  %v744_v1 = vmul.f32 %v1453_v38, %v743_v55 }
 0x139   : > { %882 = vmatpush1.bf16.msra.mxu1 %v1547_v43  ;;  %905 = vmatprep.mubr.bf16.mxu1 %v1659_v34  ;;  %v749_v2 = vrot.slane %v747_v58, 1  ;;  %v716_v3 = vrot.slane %v714_v52, 2  ;;  %v736_v5 = vrot.slane %v734_v54, 2  ;;  %v756_v8 = vrot.slane %v754_v59, 2 }
 0x13a   : > { %883 = vmatprep.subr.bf16.mxu1 %v1552_v48  ;;  %v711_v0 = vadd.f32 %v709_v57, %v704_v56  ;;  %v731_v4 = vadd.f32 %v729_v62, %v724_v61  ;;  %v1996_v38 = vsub.s32 0, %v988_v33  ;;  %v1000_v39 = vstv %s1958_s24 }
 0x13b   : > { %v751_v7 = vadd.f32 %v749_v2, %v744_v1  ;;  %v1999_v40 = vsub.s32 1, %v988_v33  ;;  %v1016_v41 = vstv %s1960_s25  ;;  %v2004_v42 = vsub.s32 2, %v988_v33 }
 0x13c   : > { %v718_v10 = vadd.f32 %v716_v3, %v711_v0  ;;  %v738_v12 = vadd.f32 %v736_v5, %v731_v4  ;;  %v1064_v43 = vstv %s1962_s26  ;;  %v2007_v44 = vsub.s32 4, %v988_v33  ;;  %s415_s26 = scalar_lea.vmem %s2127_s9, %s1834_s11 }
 0x13d   : > { %884 = vmatpush1.bf16.msra.mxu1 %v1550_v60  ;;  %v758_v16 = vadd.f32 %v756_v8, %v751_v7  ;;  %v1080_v45 = vstv %s1964_s27  ;;  %v1096_v46 = vstv %s1966_s28  ;;  %v2012_v47 = vsub.s32 5, %v988_v33 }
 0x13e   : > { %885 = vmatprep.subr.bf16.mxu1 %v1555_v63  ;;  %v741_v18 = vadd.f32 %v740_v6, %v738_v12  ;;  %v721_v21 = vadd.f32 %v720_v15, %v718_v10  ;;  %v956_v48 = vstv %s1974_s15  ;;  %v1160_v49 = vstv %s1970_s10 }
 0x13f   : > { %v761_v19 = vadd.f32 %v760_v13, %v758_v16  ;;  %v1176_v50 = vstv %s1972_s12  ;;  %v2017_v51 = vsub.s32 6, %v988_v33  ;;  %v960_v52 = vstv %s1976_s16 }
 0x140   : > { %v763_v22 = vrot.slane %v741_v18, 7  ;;  %v972_v53 = vstv %s1978_s17  ;;  %v1036_v60 = vstv %s1980_s14  ;;  %v1040_v61 = vstv %s1982_s18 }
 0x141   : > { %886 = vmatpush1.bf16.msra.mxu1 %v1553_v9  ;;  %v766_v24 = vrot.slane %v761_v19, 6  ;;  %v1052_v62 = vstv %s1984_s19  ;;  %v1112_v0 = vstv %s1993_s22  ;;  %v1116_v1 = vstv %s1986_s20 }
 0x142   : > { %887 = vmatprep.subr.bf16.mxu1 %v1558_v17  ;;  %v769_v25 = vsel %vm768_vm2, %v721_v21, %v763_v22  ;;  %v1120_v2 = vstv %s1988_s21  ;;  %v1132_v3 = vstv %s1990_s13  ;;  %v1192_v7 = vstv %s2001_s0 }
 0x143   : > { %v771_v26 = vsel %vm770_vm3, %v769_v25, %v766_v24 }
 0x144   : > { %v772_v27 = vadd.f32 %v771_v26, %v701_v20 }
 0x145   : > { %888 = vmatpush1.bf16.msra.mxu1 %v1556_v23 }
 0x146   : > { %v773_v28 = vpack.c.bf16 %v772_v27, %v772_v27 }
 0x148   : > { %1410 = vmatmul.mubr.msk.bf16.vlgmr.msra.gmra.mxu1 %vm641_vm1, %v773_v28  ;;  %1411 = vmatmul.mubr.msk.bf16.vlgmr.msra.gmra.mxu0 %vm641_vm1, %v773_v28 }
 0x1f8   : > { %v679_v30 = vpop.f32.mrf.mxu1 }
 0x1fa   : > { %v681_v31 = vpop.f32.mrf.mxu1 }
 0x1fb   : > { %v688_v32 = vcombine.low %v679_v30, %v681_v31 }
 0x1fc   : > { %v683_v34 = vpop.f32.mrf.mxu1 }
 0x1fd   : > { %v690_v37 = vsub.f32 %v1856_v11, %v688_v32  ;;  %v1144_v11 = vstv %s1968_s29 }
 0x1fe   : > { %v684_v35 = vpop.f32.mrf.mxu1 }
 0x1ff   : > { %v2021_v54 = vmul.f32 %v984_v36, %v690_v37  ;;  %v2023_v55 = vmul.f32 %v1000_v39, %v690_v37  ;;  %v2025_v56 = vmul.f32 %v1064_v43, %v690_v37  ;;  %v2027_v57 = vmul.f32 %v1080_v45, %v690_v37 }
 0x200   : > { %v2029_v58 = vmul.f32 %v1096_v46, %v690_v37  ;;  %v2031_v59 = vmul.f32 %v1144_v11, %v690_v37  ;;  %v2036_v63 = vmul.f32 %v1160_v49, %v690_v37  ;;  %v2046_v6 = vmul.f32 %v1016_v41, %v690_v37 }
 0x201   : > { %v990_v4 = vrot.slane %v2021_v54, %v1996_v38  ;;  %v1006_v5 = vrot.slane %v2023_v55, %v1999_v40  ;;  %v1070_v8 = vrot.slane %v2025_v56, %v1996_v38  ;;  %v1086_v9 = vrot.slane %v2027_v57, %v1999_v40 }
 0x202   : > { %v1102_v10 = vrot.slane %v2029_v58, %v2004_v42  ;;  %v1150_v12 = vrot.slane %v2031_v59, %v1996_v38  ;;  %v1166_v15 = vrot.slane %v2036_v63, %v1999_v40  ;;  %v2061_v16 = vmul.f32 %v1176_v50, %v690_v37 }
 0x203   : > { %v994_v17 = vrot.slane %v2021_v54, %v2007_v44  ;;  %v1010_v18 = vrot.slane %v2023_v55, %v2012_v47  ;;  %v1074_v22 = vrot.slane %v2025_v56, %v2007_v44 }
 0x208   : > { %v907_v13 = vpop.f32.mrf.mxu1  ;;  %v2057_v14 = vpop.f32.mrf.mxu0 }
 0x209   : > { %v957_v19 = vmul.f32 %v956_v48, %v907_v13  ;;  %v961_v20 = vmul.f32 %v960_v52, %v907_v13  ;;  %v973_v21 = vmul.f32 %v972_v53, %v907_v13  ;;  %v1037_v23 = vmul.f32 %v1036_v60, %v907_v13 }
 0x20a   : > { %v1041_v24 = vmul.f32 %v1040_v61, %v907_v13  ;;  %v1053_v25 = vmul.f32 %v1052_v62, %v907_v13  ;;  %v1121_v26 = vmul.f32 %v1120_v2, %v907_v13  ;;  %v909_v27 = vpop.f32.mrf.mxu1  ;;  %v2069_v28 = vpop.f32.mrf.mxu0  ;;  %v1117_v31 = vmul.f32 %v1116_v1, %v907_v13 }
 0x20b   : > { %v965_v29 = vrot.slane %v961_v20, 1  ;;  %v977_v30 = vrot.slane %v973_v21, 2  ;;  %v1133_v32 = vmul.f32 %v1132_v3, %v907_v13  ;;  %v958_v35 = vmul.f32 %v956_v48, %v909_v27 }
 0x20c   : > { %v1045_v33 = vrot.slane %v1041_v24, 1  ;;  %v1125_v34 = vrot.slane %v1121_v26, 1  ;;  %v962_v36 = vmul.f32 %v960_v52, %v909_v27  ;;  %v911_v37 = vpop.f32.mrf.mxu1  ;;  %v952_v38 = vpop.f32.mrf.mxu0  ;;  %v1057_v40 = vrot.slane %v1053_v25, 2 }
 0x20d   : > { %v969_v39 = vadd.f32 %v965_v29, %v957_v19  ;;  %v1137_v41 = vrot.slane %v1133_v32, 2  ;;  %v974_v43 = vmul.f32 %v972_v53, %v909_v27  ;;  %v1042_v49 = vmul.f32 %v1040_v61, %v909_v27 }
 0x20e   : > { %v1049_v45 = vadd.f32 %v1045_v33, %v1037_v23  ;;  %v1129_v46 = vadd.f32 %v1125_v34, %v1117_v31  ;;  %v966_v11 = vrot.slane %v962_v36, 1  ;;  %v912_v50 = vpop.f32.mrf.mxu1  ;;  %v953_v54 = vpop.f32.mrf.mxu0  ;;  %v1038_v20 = vmul.f32 %v1036_v60, %v909_v27 }
 0x20f   : > { %v981_v55 = vadd.f32 %v977_v30, %v969_v39  ;;  %v978_v56 = vrot.slane %v974_v43, 2  ;;  %v1054_v13 = vmul.f32 %v1052_v62, %v909_v27  ;;  %v1046_v24 = vrot.slane %v1042_v49, 1 }
 0x210   : > { %v1061_v21 = vadd.f32 %v1057_v40, %v1049_v45  ;;  %v1141_v48 = vadd.f32 %v1137_v41, %v1129_v46  ;;  %v970_v52 = vadd.f32 %v966_v11, %v958_v35  ;;  %v1122_v53 = vmul.f32 %v1120_v2, %v909_v27 }
 0x211   : > { %v997_v26 = vadd.f32 %v990_v4, %v981_v55  ;;  %v1058_v19 = vrot.slane %v1054_v13, 2  ;;  %v1134_v23 = vmul.f32 %v1132_v3, %v909_v27  ;;  %v1050_v31 = vadd.f32 %v1046_v24, %v1038_v20 }
 0x212   : > { %v1077_v25 = vadd.f32 %v1070_v8, %v1061_v21  ;;  %v1157_v29 = vadd.f32 %v1150_v12, %v1141_v48  ;;  %v982_v61 = vadd.f32 %v978_v56, %v970_v52  ;;  %v1182_v60 = vrot.slane %v2061_v16, %v2004_v42 }
 0x213   : > { %v1013_v32 = vadd.f32 %v1006_v5, %v997_v26  ;;  %v1118_v62 = vmul.f32 %v1116_v1, %v909_v27  ;;  %v1126_v30 = vrot.slane %v1122_v53, 1  ;;  %v1062_v35 = vadd.f32 %v1058_v19, %v1050_v31 }
 0x214   : > { %v1093_v33 = vadd.f32 %v1086_v9, %v1077_v25  ;;  %v1173_v34 = vadd.f32 %v1166_v15, %v1157_v29  ;;  %v998_v4 = vadd.f32 %v994_v17, %v982_v61  ;;  %v1022_v2 = vrot.slane %v2046_v6, %v2004_v42 }
 0x215   : > { %v1090_v3 = vrot.slane %v2027_v57, %v2012_v47  ;;  %v1130_v5 = vadd.f32 %v1126_v30, %v1118_v62  ;;  %v1138_v8 = vrot.slane %v1134_v23, 2  ;;  %v1078_v27 = vadd.f32 %v1074_v22, %v1062_v35 }
 0x216   : > { %v1109_v1 = vadd.f32 %v1102_v10, %v1093_v33  ;;  %v1189_v12 = vadd.f32 %v1182_v60, %v1173_v34  ;;  %v1014_v9 = vadd.f32 %v1010_v18, %v998_v4  ;;  %v1026_v15 = vrot.slane %v2046_v6, %v2017_v51 }
 0x217   : > { %v1142_v17 = vadd.f32 %v1138_v8, %v1130_v5  ;;  %v1154_v36 = vrot.slane %v2031_v59, %v2007_v44  ;;  %v1029_v37 = vadd.f32 %v1022_v2, %v1013_v32  ;;  %v1094_v38 = vadd.f32 %v1090_v3, %v1078_v27 }
 0x218   : > { %v1113_v57 = vadd.f32 %v1112_v0, %v1109_v1  ;;  %v1106_v39 = vrot.slane %v2029_v58, %v2017_v51  ;;  %v1032_v42 = vstv %s2073_s23  ;;  %v1193_v10 = vadd.f32 %v1192_v7, %v1189_v12 }
 0x219   : > { %v1158_v18 = vadd.f32 %v1154_v36, %v1142_v17  ;;  %v1170_v6 = vrot.slane %v2036_v63, %v2012_v47  ;;  %v1030_v40 = vadd.f32 %v1026_v15, %v1014_v9  ;;  %v1186_v44 = vrot.slane %v2061_v16, %v2017_v51 }
 0x21a   : > { %v1197_v22 = vrot.slane %v1113_v57, 7  ;;  %v1110_v41 = vadd.f32 %v1106_v39, %v1094_v38  ;;  %v1033_v59 = vadd.f32 %v1032_v42, %v1029_v37  ;;  %v1203_v58 = vrot.slane %v1193_v10, 6 }
 0x21b   : > { %v1174_v43 = vadd.f32 %v1170_v6, %v1158_v18  ;;  %v1034_v49 = vadd.f32 %v1032_v42, %v1030_v40 }
 0x21c   : > { %v1114_v45 = vadd.f32 %v1112_v0, %v1110_v41  ;;  %v1207_v11 = vsel %vm768_vm2, %v1033_v59, %v1197_v22 }
 0x21d   : > { %v1190_v46 = vadd.f32 %v1186_v44, %v1174_v43  ;;  %v1209_v63 = vsel %vm770_vm3, %v1207_v11, %v1203_v58 }
 0x21e   : > { %v1198_v50 = vrot.slane %v1114_v45, 7  ;;  %v1211_v51 = vadd.f32 %v1209_v63, %v2057_v14 }
 0x21f   : > { %v1194_v54 = vadd.f32 %v1192_v7, %v1190_v46 }
 0x220   : > { %v1208_v47 = vsel %vm768_vm2, %v1034_v49, %v1198_v50 }
 0x221   : > { %v1204_v55 = vrot.slane %v1194_v54, 6 }
 0x223   : > { %v1210_v56 = vsel %vm770_vm3, %v1208_v47, %v1204_v55 }
 0x224   : > { %v1212_v16 = vadd.f32 %v1210_v56, %v2069_v28 }
 0x226   : > { %v1215_v0 = vcombine.low %v1211_v51, %v1212_v16 }
 0x228   : > { %1217 = vst [vmem:[%s415_s26] sm:$0x77] %v1215_v0 }
 0x229 PF: > { %s23_s30 = sadd.s32 1, %s1652_s30  }
 0x22a   : > { %p20_p2 = scmp.ge.s32.totalorder %s23_s30, 4  }
 0x22c   :  { %22 = sbr.rel (!%p20_p2) target bundleno = 6 (0x6), region = 111 }
 0x231   :  { %1239 = vsyncpa [#allocation3], 1 }
 0x232   :  { %1241 = vsyncpa [#allocation3 + $0x1], 1 }
 0x233   :  { %1242 = vsyncpa [#allocation4], 1 }
 0x234   :  { %1244 = vsyncpa [#allocation4 + $0x1], 1 }
 0x235   :  { %1245 = vsyncpa [#allocation6], 1 }
 0x236   :  { %1246 = vsyncpa [#allocation9], 1 }

</bundles_post_ra>
